<compile_context>
chip_gen: v7x
topology: tpu7x:2x2x1
jax: 0.10.0
libtpu: 0.0.40
codegen_flags: <defaults>
</compile_context>

<pallas_src>
import jax
import jax.numpy as jnp
from jax import lax
from jax.experimental import pallas as pl
from jax.experimental.pallas import tpu as pltpu

_LANE = 128


def _translate_kernel(pc_ref, t_ref, out_ref):
    # pc_ref/out_ref: (3, tile_n) f32 VMEM tiles; t_ref: (3,) f32 in SMEM.
    x = pc_ref[...]
    row = lax.broadcasted_iota(jnp.int32, x.shape, 0)
    # Build the per-row translation from the 3 SMEM scalars (VPU filler work;
    # the kernel is HBM-bound so this is free). One full-tile vadd + store.
    tv = jnp.where(row == 0, t_ref[0], jnp.where(row == 1, t_ref[1], t_ref[2]))
    out_ref[...] = x + tv


def _parse_range(translation_range):
    """Mirror RandomTranslation.__init__ range handling (float or [lo, hi])."""
    if isinstance(translation_range, (int, float)) and not isinstance(translation_range, bool):
        r = float(translation_range)
        if r < 0.0:
            raise ValueError("If translation_range is a single number, it must be positive.")
        return -r, r
    if len(translation_range) != 2:
        raise ValueError("If translation_range is a list, it must have length 2.")
    lo, hi = float(translation_range[0]), float(translation_range[1])
    if lo > hi:
        lo, hi = hi, lo
    return lo, hi


def translate_pc_pallas(pc, tvec, *, tile_n=4096, min_pallas_points=1024):
    """pc: (3, N) float array, tvec: (3,) translation vector."""
    F, N = pc.shape
    assert F == 3, "pc must have shape (3, num_points)"

    # For toy clouds, the pallas_call launch/pipeline prologue dominates a
    # single streaming add -> let XLA fuse it.
    if N < min_pallas_points:
        return pc + tvec[:, None]

    # Tile over points: multiple of 128 lanes, capped at tile_n, ragged N padded.
    tile = min(int(tile_n), pl.cdiv(N, _LANE) * _LANE)
    tile = max(_LANE, (tile // _LANE) * _LANE)
    n_total = pl.cdiv(N, tile) * tile
    pc_in = pc if n_total == N else jnp.pad(pc, ((0, 0), (0, n_total - N)))
    grid = (n_total // tile,)

    itemsize = jnp.dtype(pc.dtype).itemsize
    # VMEM budget: 3 rows pad to 8 sublanes, double-buffered, input + output.
    vmem_bytes = 2 * 2 * 8 * tile * itemsize + (2 << 20)
    vmem_bytes = int(min(max(vmem_bytes, 4 << 20), 64 << 20))

    out = pl.pallas_call(
        _translate_kernel,
        out_shape=jax.ShapeDtypeStruct((F, n_total), pc.dtype),
        grid_spec=pltpu.PrefetchScalarGridSpec(
            num_scalar_prefetch=0,
            grid=grid,
            in_specs=[
                pl.BlockSpec((F, tile), lambda j: (0, j)),           # streaming pc tile
                pl.BlockSpec(memory_space=pltpu.MemorySpace.SMEM),   # (3,) translation scalars
            ],
            out_specs=pl.BlockSpec((F, tile), lambda j: (0, j)),
        ),
        compiler_params=pltpu.CompilerParams(
            dimension_semantics=("parallel",),
            vmem_limit_bytes=vmem_bytes,
        ),
        cost_estimate=pl.CostEstimate(
            flops=3 * n_total,
            transcendentals=0,
            bytes_accessed=2 * 3 * n_total * itemsize,
        ),
    )(pc_in, tvec.astype(pc.dtype))

    return out[:, :N] if n_total != N else out


def random_translation(pc, key, translation_range, *, tile_n=4096):
    """RandomTranslation.forward: sample tvec ~ U[lo, hi)^3 and translate pc."""
    lo, hi = _parse_range(translation_range)
    tvec = jax.random.uniform(key, (3,), dtype=pc.dtype, minval=lo, maxval=hi)
    return translate_pc_pallas(pc, tvec, tile_n=tile_n)


if __name__ == "__main__":
    key = jax.random.PRNGKey(0)
    k_pc, k_t = jax.random.split(key)

    # Case 1: Pallas path, N a multiple of the tile (grid=(4,) -> shards across
    # both TensorCores on v7x). Still small: 3*16384 f32 = 192 KiB.
    N1 = 16384
    pc1 = jax.random.normal(k_pc, (3, N1), dtype=jnp.float32)
    out1 = jax.block_until_ready(random_translation(pc1, k_t, 0.5))
    tvec1 = jax.random.uniform(k_t, (3,), dtype=jnp.float32, minval=-0.5, maxval=0.5)
    ref1 = pc1 + tvec1[:, None]
    assert out1.shape == (3, N1) and out1.dtype == jnp.float32
    assert jnp.allclose(out1, ref1, atol=1e-6), "mismatch vs reference (case 1)"

    # Case 2: Pallas path, ragged N (padded internally, sliced back).
    N2 = 10000
    pc2 = jax.random.normal(k_pc, (3, N2), dtype=jnp.float32)
    out2 = jax.block_until_ready(random_translation(pc2, k_t, [-0.25, 0.75]))
    tvec2 = jax.random.uniform(k_t, (3,), dtype=jnp.float32, minval=-0.25, maxval=0.75)
    ref2 = pc2 + tvec2[:, None]
    assert out2.shape == (3, N2)
    assert jnp.allclose(out2, ref2, atol=1e-6), "mismatch vs reference (case 2)"

    # Case 3: tiny cloud -> XLA fallback path (no pallas_call).
    N3 = 256
    pc3 = jax.random.normal(k_pc, (3, N3), dtype=jnp.float32)
    out3 = jax.block_until_ready(random_translation(pc3, k_t, 0.5))
    ref3 = pc3 + tvec1[:, None]
    assert out3.shape == (3, N3)
    assert jnp.allclose(out3, ref3, atol=1e-6), "mismatch vs reference (case 3)"

    print("KERNEL_OK")
</pallas_src>

<mosaic_0001>
module attributes {stable_mosaic.version = 11 : i64} {
  func.func @_translate_kernel(%arg0: i32, %arg1: memref<3x4096xf32, #tpu.memory_space<vmem>>, %arg2: memref<3xf32, #tpu.memory_space<smem>>, %arg3: memref<3x4096xf32, #tpu.memory_space<vmem>>) attributes {dimension_semantics = [#tpu.dimension_semantics<parallel>], iteration_bounds = array<i64: 4>, scalar_prefetch = 0 : i64, scratch_operands = 0 : i64, tpu.core_type = #tpu.core_type<tc>, window_params = [{transform_indices = @transform_0, window_bounds = array<i64: 3, 4096>}, {transform_indices = @transform_1, window_bounds = array<i64: 3>}, {transform_indices = @transform_2, window_bounds = array<i64: 3, 4096>}]} {
    %c0 = arith.constant 0 : index
    %c0_0 = arith.constant 0 : index
    %0 = vector.load %arg1[%c0, %c0_0] : memref<3x4096xf32, #tpu.memory_space<vmem>>, vector<3x4096xf32>
    %1 = tpu.iota {dimensions = array<i32: 0>} : vector<3x4096xi32>
    %c0_i32 = arith.constant 0 : i32
    %2 = vector.broadcast %c0_i32 : i32 to vector<3x4096xi32>
    %3 = arith.cmpi eq, %1, %2 : vector<3x4096xi32>
    %c0_1 = arith.constant 0 : index
    %4 = memref.load %arg2[%c0_1] : memref<3xf32, #tpu.memory_space<smem>>
    %c1_i32 = arith.constant 1 : i32
    %5 = vector.broadcast %c1_i32 : i32 to vector<3x4096xi32>
    %6 = arith.cmpi eq, %1, %5 : vector<3x4096xi32>
    %c1 = arith.constant 1 : index
    %7 = memref.load %arg2[%c1] : memref<3xf32, #tpu.memory_space<smem>>
    %c2 = arith.constant 2 : index
    %8 = memref.load %arg2[%c2] : memref<3xf32, #tpu.memory_space<smem>>
    %9 = vector.broadcast %7 : f32 to vector<3x4096xf32>
    %10 = vector.broadcast %8 : f32 to vector<3x4096xf32>
    %11 = arith.select %6, %9, %10 : vector<3x4096xi1>, vector<3x4096xf32>
    %12 = vector.broadcast %4 : f32 to vector<3x4096xf32>
    %13 = arith.select %3, %12, %11 : vector<3x4096xi1>, vector<3x4096xf32>
    %14 = arith.addf %0, %13 : vector<3x4096xf32>
    %c0_2 = arith.constant 0 : index
    %c0_3 = arith.constant 0 : index
    %15 = vector.load %arg3[%c0_2, %c0_3] : memref<3x4096xf32, #tpu.memory_space<vmem>>, vector<3x4096xf32>
    tpu.vector_store %arg3[%c0_2, %c0_3], %14 {strides = array<i32>} : memref<3x4096xf32, #tpu.memory_space<vmem>>, vector<3x4096xf32>,
    return
  }
  func.func @transform_0(%arg0: i32) -> (i32, i32) {
    %c0_i32 = arith.constant 0 : i32
    %c0_i32_0 = arith.constant 0 : i32
    return %c0_i32, %arg0 : i32, i32
  }
  func.func @transform_1(%arg0: i32) -> i32 {
    %c0_i32 = arith.constant 0 : i32
    %c0_i32_0 = arith.constant 0 : i32
    return %c0_i32 : i32
  }
  func.func @transform_2(%arg0: i32) -> (i32, i32) {
    %c0_i32 = arith.constant 0 : i32
    %c0_i32_0 = arith.constant 0 : i32
    return %c0_i32, %arg0 : i32, i32
  }
}

</mosaic_0001>

<bundles_post_ra>
// kernel: tpu_custom_call.1
= control target key start
LH: loop header
LB: loop body
LE: loop exit
PB: predicated region body
PF: predicated region fallthrough
CT: control target
= control target key end

     0   :  { %7 = vsyncpa [#allocation3], 0  ;;  %s787_s0 = inlined_call_operand.hbm [shape: f32[3,16384], index: 0, kind: input, shape index: {}]   ;;  %s788_s1 = inlined_call_operand.vmem [shape: f32[3], index: 1, kind: input, shape index: {}]   ;;  %s789_s2 = inlined_call_operand.hbm [shape: f32[3,16384], index: 2, kind: output, shape index: {}]  }
   0x1   :  { %9 = vsyncpa [#allocation3 + $0x1], 0 }
   0x2   :  { %10 = vsyncpa [#allocation5], 0 }
   0x3   :  { %11 = vsyncpa [#allocation4], 0 }
   0x4   :  { %13 = vsyncpa [#allocation4 + $0x1], 0  ;;  %s556_s9 = smov 0   ;;  %s558_s10 = smov 0  }
   0x5   :  { %s560_s11 = smov 0   ;;  %s562_s12 = smov 0  }
   0x6 LB: > { %s577_s13 = sadd.s32 4294967295, %s535_s12   ;;  %s342_s14 = sadd.s32 4294967294, %s535_s12   ;;  %s535_s12 = sphi %s562_s12, %s809_s12   ;;  %s531_s11 = sphi %s560_s11, %s808_s11   ;;  %s527_s10 = sphi %s558_s10, %s807_s10   ;;  %s523_s9 = sphi %s556_s9, %s806_s9  }
   0x7   : > { %p39_p0 = scmp.ne.s32.totalorder %s527_s10, %s523_s9  ;;  %p790_p1 = scmp.eq.s32.totalorder %s577_s13, 0 }
   0x8   : > { %p90_p3 = scmp.eq.s32.totalorder %s342_s14, 3  ;;  %p343_p5 = scmp.ge.s32.totalorder %s535_s12, 1 }
   0x9   : > { %p586_p4 = por %p790_p1, %p39_p0  ;;  %p97_p7 = scmp.lt.s32.totalorder %s535_s12, 5 }
   0xa   : > { %p591_p6 = por %p90_p3, %p39_p0  ;;  %s110_s19 = sshll.u32 %s788_s1, 4  ;;  %s111_s19 = int_to_ptr.vmem [resolvable:$true] %s110_s19 }
   0xb   : > { %s793_s15 = scalar_select %p586_p4, 1, 0 }
   0xc   : > { %s794_s16 = scalar_select %p591_p6, 1, 0 }
   0xd   : > { %p599_p8 = pnand %p343_p5, %p97_p7  ;;  %s606_s21 = sadd.s32 1, %s535_s12  }
   0xe   : > { %s23_s23 = ssub.s32 %s535_s12, %s606_s21  ;;  %s26_s25 = sadd.s32 1, %s531_s11 }
   0xf   : > { %p370_p9 = pneg %p599_p8  ;;  %p616_p11 = scmp.eq.s32.totalorder %s23_s23, 0 }
  0x10   : > { %p33_p12 = scmp.ne.s32.totalorder %s531_s11, %s527_s10  ;;  %s420_s26 = scalar_lea.vmem %s111_s19, 16 }
  0x11   : > { %p610_p10 = pnand %p370_p9, %p790_p1  ;;  %p421_p13 = scmp.ne.s32.totalorder %s111_s19, %s420_s26 }
  0x12   : > { %p428_p7 = scmp.lt.s32.totalorder %s111_s19, %s111_s19  ;;  %p429_p2 = scmp.lt.s32.totalorder %s420_s26, %s420_s26 }
  0x13   : > { %p422_p0 = pneg %p610_p10 }
  0x14   : > { %p430_p9 = por %p429_p2, %p428_p7 }
  0x15   : > { %p423_p3 = pnand %p422_p0, %p421_p13 }
  0x17   : > { %p424_p5 = pneg %p423_p3 }
  0x19   : > { %p431_p1 = pnand %p430_p9, %p424_p5 }
  0x1b   : > { %434 = shalt.err (!%p431_p1)
}
  0x1c   : > { %s537_s27 = smov [#allocation6]   ;;  %p34_p2 = scmp.eq.s32.totalorder %s535_s12, 0 }
  0x1d   : > { %373 = dma.vmem_to_smem (!%p610_p10), %s111_s19, 16, %s537_s27, [#allocation5]  }
  0x1e   : > { %s630_s28 = scalar_select %p616_p11, %s531_s11, %s26_s25  }
  0x1f   : > { %p798_p1 = scmp.eq.s32.totalorder %s577_s13, 3  ;;  %p383_p0 = scmp.lt.s32.totalorder %s535_s12, 4 }
  0x20   : > { %s121_s30 = sand.u32 1, %s531_s11   ;;  %p35_p3 = por %p34_p2, %p33_p12 }
  0x21   : > { %p638_p13 = por %p798_p1, %p33_p12  ;;  %s346_s3 = sshll.u32 %s121_s30, 7 }
  0x22   : > { %s360_s4 = sshll.u32 %s535_s12, 11  ;;  %s125_s8 = scalar_lea.vmem [#allocation2], %s346_s3 }
  0x23   : > { %s799_s29 = scalar_select %p638_p13, 1, 0 }
  0x24   : > { %s651_s7 = scalar_lea.hbm %s787_s0, %s360_s4  ;;  %s133_s14 = sshll.u32 %s125_s8, 4  ;;  %s657_s14 = int_to_ptr.vmem [resolvable:$true] %s133_s14 }
  0x25   : > { %p653_p10 = pnand %p383_p0, %p35_p3  ;;  %s122_s18 = scalar_lea.sflag [#allocation3], %s121_s30 }
  0x26   : > { %s435_s19 = scalar_lea.hbm %s651_s7, 2048  ;;  %s440_s24 = scalar_lea.hbm %s787_s0, 8192 }
  0x27   : > { %p436_p11 = scmp.ne.s32.totalorder %s651_s7, %s435_s19  ;;  %p437_p12 = pneg %p653_p10 }
  0x28   : > { %p441_p9 = scmp.lt.u32.totalorder %s651_s7, %s787_s0  ;;  %p442_p2 = scmp.lt.u32.totalorder %s440_s24, %s435_s19 }
  0x29   : > { %p438_p5 = pnand %p437_p12, %p436_p11  ;;  %p444_p0 = scmp.lt.u32.totalorder %s435_s19, %s651_s7 }
  0x2a   : > { %p443_p1 = por %p442_p2, %p441_p9 }
  0x2b   : > { %p439_p7 = pneg %p438_p5 }
  0x2c   : > { %p445_p3 = por %p444_p0, %p443_p1 }
  0x2e   : > { %p446_p6 = pnand %p445_p3, %p439_p7 }
  0x30   : > { %449 = shalt.err (!%p446_p6)
}
  0x31   : > { %s450_s27 = scalar_lea.vmem %s657_s14, 2048  ;;  %s538_s30 = smov [#allocation2]  }
  0x32   : > { %p451_p11 = scmp.ne.s32.totalorder %s657_s14, %s450_s27  ;;  %s455_s3 = sshll.u32 %s538_s30, 4  ;;  %s456_s3 = int_to_ptr.vmem [resolvable:$false] %s455_s3 }
  0x33   : > { %s457_s4 = scalar_lea.vmem %s456_s3, 4096  ;;  %p458_p4 = scmp.lt.s32.totalorder %s657_s14, %s456_s3 }
  0x34   : > { %p453_p5 = pnand %p451_p11, %p437_p12  ;;  %p459_p9 = scmp.lt.s32.totalorder %s457_s4, %s450_s27 }
  0x36   : > { %p454_p13 = pneg %p453_p5  ;;  %p460_p2 = por %p459_p9, %p458_p4 }
  0x38   : > { %p461_p1 = pnand %p460_p2, %p454_p13 }
  0x3a   : > { %464 = shalt.err (!%p461_p1)
}
  0x3b   : > { %377 = dma.hbm_to_vmem [thread:$0]  (!%p653_p10), %s651_s7, 2048, %s657_s14, %s122_s18  }
  0x3c   : > { %142 = sbr.rel (%p599_p8) target bundleno = 109 (0x6d), region = 28  ;;  %s687_s5 = sand.u32 (!%p599_p8), 1, %s527_s10  }
  0x3d   : > { %s350_s6 = sshll.u32 (!%p599_p8), %s687_s5, 7  ;;  %s145_s8 = scalar_lea.sflag (!%p599_p8), [#allocation3], %s687_s5 }
  0x3e   : > { %s693_s19 = scalar_lea.vmem (!%p599_p8), [#allocation2], %s350_s6  ;;  %p801_p4 = scmp.ne.s32.totalorder (!%p599_p8), %s793_s15, 0 }
  0x43   : > { %510 = dma.done.wait (%p801_p4), %s145_s8, 2048  }
  0x44   : > { %512 = vsyncadd (%p801_p4), %s145_s8, 4294965248  ;;  %p802_p6 = scmp.eq.s32.totalorder %s577_s13, 0 }
  0x46   : > { %514 = dma.done.wait (%p802_p6), [#allocation5], 16   ;;  %p803_p8 = pmov %p802_p6 }
  0x48   : > { %516 = vsyncadd (%p803_p8), [#allocation5], 4294967280 }
  0x49   : > { %157 = sfence }
  0x4a   : > { %v192_v0 = vlaneseq  ;;  %s195_s20 = sld [smem:[#allocation6]]  ;;  %s353_s7 = sld [smem:[#allocation6 + $0x1]]  ;;  %v539_v2 = vmov 839922192   ;;  %v176_v7 = vld [vmem:[%s693_s19] sm:$0x77] }
  0x4b   : > { %s354_s14 = sld [smem:[#allocation6 + $0x2]]  ;;  %v206_v3 = vunpack.c.l.s4 %v539_v2  ;;  %v177_v10 = vld [vmem:[%s693_s19 + $0x8] sm:$0x77]  ;;  %v178_v12 = vld [vmem:[%s693_s19 + $0x10] sm:$0x77]  ;;  %s361_s15 = sshll.u32 %s577_s13, 11 }
  0x4c   : > { %v193_v1 = vshrl.u32 %v192_v0, 7  ;;  %v179_v13 = vld [vmem:[%s693_s19 + $0x18] sm:$0x77]  ;;  %v180_v14 = vld [vmem:[%s693_s19 + $0x20] sm:$0x77]  ;;  %s722_s17 = scalar_lea.vmem [#allocation7], %s350_s6  ;;  %s736_s23 = scalar_lea.hbm %s789_s2, %s361_s15 }
  0x4d   : > { %v207_v4 = vunpack.c.0.s8 %v206_v3  ;;  %v181_v16 = vld [vmem:[%s693_s19 + $0x28] sm:$0x77]  ;;  %v182_v17 = vld [vmem:[%s693_s19 + $0x30] sm:$0x77]  ;;  %v183_v18 = vld [vmem:[%s693_s19 + $0x38] sm:$0x77] }
  0x4e   : > { %vm196_vm0 = vcmp.eq.s32.totalorder %v193_v1, 1  ;;  %vm194_vm1 = vcmp.eq.s32.totalorder %v193_v1, 0  ;;  %v184_v20 = vld [vmem:[%s693_s19 + $0x40] sm:$0x77]  ;;  %v185_v21 = vld [vmem:[%s693_s19 + $0x48] sm:$0x77] }
  0x4f   : > { %v210_v6 = vsub.s32 %v207_v4, %v193_v1  ;;  %v186_v22 = vld [vmem:[%s693_s19 + $0x50] sm:$0x77]  ;;  %v187_v23 = vld [vmem:[%s693_s19 + $0x58] sm:$0x77]  ;;  %v188_v24 = vld [vmem:[%s693_s19 + $0x60] sm:$0x77] }
  0x50   : > { %v202_v5 = vstv %s195_s20  ;;  %v199_v8 = vstv %s353_s7  ;;  %v189_v25 = vld [vmem:[%s693_s19 + $0x68] sm:$0x77]  ;;  %v190_v30 = vld [vmem:[%s693_s19 + $0x70] sm:$0x77]  ;;  %s260_s18 = sshll.u32 %s722_s17, 4  ;;  %s246_s24 = scalar_lea.sflag [#allocation4], %s687_s5  ;;  %s738_s18 = int_to_ptr.vmem [resolvable:$true] %s260_s18 }
  0x51   : > { %v200_v9 = vstv %s354_s14  ;;  %v191_v31 = vld [vmem:[%s693_s19 + $0x78] sm:$0x77]  ;;  %s465_s25 = scalar_lea.vmem %s738_s18, 2048  ;;  %p804_p10 = scmp.ne.s32.totalorder %s799_s29, 0 }
  0x52   : > { %v201_v11 = vsel %vm196_vm0, %v199_v8, %v200_v9  ;;  %p466_p13 = scmp.ne.s32.totalorder %s738_s18, %s465_s25  ;;  %s540_s26 = smov [#allocation7]  }
  0x53   : > { %v203_v15 = vsel %vm194_vm1, %v202_v5, %v201_v11  ;;  %s469_s27 = sshll.u32 %s540_s26, 4  ;;  %s470_s27 = int_to_ptr.vmem [resolvable:$false] %s469_s27 }
  0x54   : > { %v211_v19 = vrot.slane %v203_v15, %v210_v6  ;;  %p467_p12 = pnand %p466_p13, %p804_p10  ;;  %s471_s30 = scalar_lea.vmem %s470_s27, 4096 }
  0x55   : > { %p472_p0 = scmp.lt.s32.totalorder %s738_s18, %s470_s27  ;;  %p473_p3 = scmp.lt.s32.totalorder %s471_s30, %s465_s25 }
  0x56   : > { %v213_v26 = vadd.f32 %v211_v19, %v176_v7  ;;  %v214_v27 = vadd.f32 %v211_v19, %v177_v10  ;;  %v215_v28 = vadd.f32 %v211_v19, %v178_v12  ;;  %v216_v29 = vadd.f32 %v211_v19, %v179_v13  ;;  %p468_p7 = pneg %p467_p12 }
  0x57   : > { %v217_v32 = vadd.f32 %v211_v19, %v180_v14  ;;  %v218_v33 = vadd.f32 %v211_v19, %v181_v16  ;;  %v219_v34 = vadd.f32 %v211_v19, %v182_v17  ;;  %v220_v35 = vadd.f32 %v211_v19, %v183_v18  ;;  %p474_p11 = por %p473_p3, %p472_p0 }
  0x58   : > { %229 = vst [vmem:[%s722_s17] sm:$0x77] %v213_v26  ;;  %230 = vst [vmem:[%s722_s17 + $0x8] sm:$0x77] %v214_v27  ;;  %v221_v36 = vadd.f32 %v211_v19, %v184_v20  ;;  %v222_v37 = vadd.f32 %v211_v19, %v185_v21  ;;  %v223_v38 = vadd.f32 %v211_v19, %v186_v22 }
  0x59   : > { %231 = vst [vmem:[%s722_s17 + $0x10] sm:$0x77] %v215_v28  ;;  %232 = vst [vmem:[%s722_s17 + $0x18] sm:$0x77] %v216_v29  ;;  %v224_v39 = vadd.f32 %v211_v19, %v187_v23  ;;  %v225_v40 = vadd.f32 %v211_v19, %v188_v24  ;;  %v226_v41 = vadd.f32 %v211_v19, %v189_v25  ;;  %p475_p5 = pnand %p474_p11, %p468_p7 }
  0x5a   : > { %233 = vst [vmem:[%s722_s17 + $0x20] sm:$0x77] %v217_v32  ;;  %234 = vst [vmem:[%s722_s17 + $0x28] sm:$0x77] %v218_v33  ;;  %v227_v42 = vadd.f32 %v211_v19, %v190_v30  ;;  %v228_v43 = vadd.f32 %v211_v19, %v191_v31 }
  0x5b   : > { %235 = vst [vmem:[%s722_s17 + $0x30] sm:$0x77] %v219_v34  ;;  %236 = vst [vmem:[%s722_s17 + $0x38] sm:$0x77] %v220_v35 }
  0x5c   : > { %237 = vst [vmem:[%s722_s17 + $0x40] sm:$0x77] %v221_v36  ;;  %238 = vst [vmem:[%s722_s17 + $0x48] sm:$0x77] %v222_v37 }
  0x5d   : > { %239 = vst [vmem:[%s722_s17 + $0x50] sm:$0x77] %v223_v38  ;;  %240 = vst [vmem:[%s722_s17 + $0x58] sm:$0x77] %v224_v39 }
  0x5e   : > { %241 = vst [vmem:[%s722_s17 + $0x60] sm:$0x77] %v225_v40  ;;  %242 = vst [vmem:[%s722_s17 + $0x68] sm:$0x77] %v226_v41 }
  0x5f   : > { %243 = vst [vmem:[%s722_s17 + $0x70] sm:$0x77] %v227_v42  ;;  %244 = vst [vmem:[%s722_s17 + $0x78] sm:$0x77] %v228_v43 }
  0x60   : > { %478 = shalt.err (!%p475_p5)
}
  0x61   : > { %s479_s3 = scalar_lea.hbm %s736_s23, 2048  ;;  %s483_s6 = scalar_lea.hbm %s789_s2, 8192 }
  0x62   : > { %p480_p9 = scmp.ne.s32.totalorder %s736_s23, %s479_s3  ;;  %p484_p4 = scmp.lt.u32.totalorder %s736_s23, %s789_s2 }
  0x63   : > { %p485_p6 = scmp.lt.u32.totalorder %s483_s6, %s479_s3  ;;  %p487_p13 = scmp.lt.u32.totalorder %s479_s3, %s736_s23 }
  0x64   : > { %p481_p2 = pnand %p480_p9, %p804_p10 }
  0x65   : > { %p486_p8 = por %p485_p6, %p484_p4 }
  0x66   : > { %p482_p1 = pneg %p481_p2 }
  0x67   : > { %p488_p12 = por %p487_p13, %p486_p8 }
  0x69   : > { %p489_p7 = pnand %p488_p12, %p482_p1 }
  0x6b   : > { %492 = shalt.err (!%p489_p7)
}
  0x6c   : > { %368 = dma.vmem_to_hbm [thread:$0]  (%p804_p10), %s738_s18, 2048, %s736_s23, %s246_s24  }
  0x6d PF: > { %p385_p0 = scmp.ge.s32.totalorder %s535_s12, 2  ;;  %s272_s20 = sand.u32 1, %s523_s9  }
  0x6e   : > { %p805_p3 = scmp.ne.s32.totalorder %s794_s16, 0  ;;  %s273_s7 = scalar_lea.sflag [#allocation4], %s272_s20 }
  0x70   : > { %p379_p11 = pnand %p385_p0, %p805_p3 }
  0x72   : > { %518 = dma.done.wait (!%p379_p11), %s273_s7, 2048  }
  0x73   : > { %520 = vsyncadd (!%p379_p11), %s273_s7, 4294965248  ;;  %p16_p5 = scmp.ge.s32.totalorder %s606_s21, 6   ;;  %s806_s9 = smov %s527_s10 }
  0x74   : > { %s807_s10 = smov %s531_s11  ;;  %s808_s11 = smov %s630_s28 }
  0x75   : > { %s809_s12 = smov %s606_s21  ;;  %18 = sbr.rel (!%p16_p5) target bundleno = 6 (0x6), region = 78 }
  0x7c   :  { %278 = vsyncpa [#allocation3], 1 }
  0x7d   :  { %280 = vsyncpa [#allocation3 + $0x1], 1 }
  0x7e   :  { %281 = vsyncpa [#allocation4], 1 }
  0x7f   :  { %283 = vsyncpa [#allocation4 + $0x1], 1 }
  0x80   :  { %284 = vsyncpa [#allocation5], 1 }
  0x81   :  { %286 = vsyncpa [#allocation5 + $0x1], 1 }

</bundles_post_ra>
